<compile_context>
chip_gen: v6e
topology: v6e:2x2x1
jax: 0.10.0
libtpu: 0.0.40
codegen_flags: <defaults>
</compile_context>

<pallas_src>
import math

import jax
import jax.numpy as jnp
from jax import lax
from jax.experimental import pallas as pl
from jax.experimental.pallas import tpu as pltpu


# ----------------------------------------------------------------------------- static shear math
def _row_shifts(H, level):
    """Per-row integer source shift: out[y, x] = img[y, x + s_y] (nearest neighbor).

    Matches PIL Image.transform(size, AFFINE, (1, level, 0, 0, 1, 0)) pixel-center convention:
    src_x = floor((x + 0.5) + level*(y + 0.5)) = x + floor(level*(y + 0.5) + 0.5).
    """
    return [int(math.floor(level * (y + 0.5) + 0.5)) for y in range(H)]


def _bands(shifts):
    """Group consecutive rows with equal shift into (y_lo, y_hi, shift) bands (static)."""
    bands = []
    y0 = 0
    n = len(shifts)
    for y in range(1, n + 1):
        if y == n or shifts[y] != shifts[y0]:
            bands.append((y0, y, shifts[y0]))
            y0 = y
    return bands


def _choose_row_block(H, W, itemsize):
    """Largest multiple-of-8 divisor of H such that in+out double-buffered blocks fit a safe
    VMEM budget (8 MiB total) on every generation (v5e 16 MiB default scoped, v7x 64 MiB phys)."""
    budget = 8 << 20                       # bytes for (in + out) x double-buffer
    max_rows = max(8, budget // (4 * W * itemsize))
    if H <= max_rows:
        return H
    best = None
    for t in range(8, (min(H, max_rows) // 8) * 8 + 1, 8):
        if H % t == 0:
            best = t
    # TODO(synk): if H has no multiple-of-8 divisor under the budget, fall back to a single full-H
    # block (correct, may need vmem_limit_bytes for very large images).
    return best if best is not None else H


# ----------------------------------------------------------------------------- Pallas kernel
def _make_shear_kernel(H, W, blk_h, level, replace):
    shifts = _row_shifts(H, level)
    n_blocks = H // blk_h
    # Static band table per row-block (local row coordinates within the block).
    block_bands = [_bands(shifts[j * blk_h:(j + 1) * blk_h]) for j in range(n_blocks)]
    # TODO(synk): for |level| >= 1 or very large H the unrolled band loop grows ~O(H*|level|);
    # a per-row SMEM shift table + fori_loop fallback would bound code size (not needed at
    # AutoAugment levels, |level| <= 0.3).

    def emit_bands(img_ref, out_ref, bands, fill):
        # All slice bounds are Python ints -> fully static loads; every store is a single
        # unmasked full-width (lane-dense) store per band.
        for y_lo, y_hi, s in bands:
            if s >= W or s <= -W:
                # Shift magnitude >= W: whole band is fill.
                out_ref[:, y_lo:y_hi, :] = fill[:, y_lo:y_hi, :]
            elif s == 0:
                out_ref[:, y_lo:y_hi, :] = img_ref[:, y_lo:y_hi, :]
            elif s > 0:
                # out[:, y, x] = img[:, y, x + s] for x < W - s; right edge filled.
                out_ref[:, y_lo:y_hi, :] = jnp.concatenate(
                    [img_ref[:, y_lo:y_hi, s:], fill[:, y_lo:y_hi, :s]], axis=-1)
            else:
                # s < 0: out[:, y, x] = img[:, y, x - k] for x >= k; left edge filled.
                k = -s
                out_ref[:, y_lo:y_hi, :] = jnp.concatenate(
                    [fill[:, y_lo:y_hi, :k], img_ref[:, y_lo:y_hi, :W - k]], axis=-1)

    def kernel(img_ref, out_ref):
        dt = out_ref.dtype
        fill = jnp.full((1, blk_h, W), replace, dt)   # hoisted once; sliced per band
        if n_blocks == 1:
            emit_bands(img_ref, out_ref, block_bands[0], fill)
        else:
            j_id = pl.program_id(1)
            for j in range(n_blocks):
                @pl.when(j_id == j)
                def _(bands=block_bands[j]):
                    emit_bands(img_ref, out_ref, bands, fill)

    return kernel


def shear_x_image_pallas(image, level, replace, *, row_block=None):
    """Unconditional X-shear of a (C, H, W) image in its native dtype."""
    C, H, W = image.shape
    if row_block is None:
        blk_h = _choose_row_block(H, W, image.dtype.itemsize)
    else:
        blk_h = int(row_block)
        assert H % blk_h == 0 and (blk_h % 8 == 0 or blk_h == H)
    n_blocks = H // blk_h
    kernel = _make_shear_kernel(H, W, blk_h, float(level), replace)

    return pl.pallas_call(
        kernel,
        out_shape=jax.ShapeDtypeStruct((C, H, W), image.dtype),
        grid=(C, n_blocks),
        in_specs=[pl.BlockSpec((1, blk_h, W), lambda c, j: (c, j, 0))],
        out_specs=pl.BlockSpec((1, blk_h, W), lambda c, j: (c, j, 0)),
        compiler_params=pltpu.CompilerParams(
            # Every (channel, row-block) tile is independent -> even megacore split on v7x.
            dimension_semantics=("parallel", "parallel"),
        ),
    )(image)


# ----------------------------------------------------------------------------- bbox shear (jnp)
def shear_bboxes(bboxs, level, W, H):
    """Forward shear of bbox corners: (x, y) -> (x - level*y, y), then min/max + clip.

    TODO(synk): exact rounding/clip convention of `functional.shear_with_bboxes` is not in the
    spec; using floor(min)/ceil(max) with clip to [0, W] (B*4 scalar work, plain jnp).
    """
    b = bboxs.astype(jnp.float32)
    min_x, min_y, max_x, max_y = b[:, 0], b[:, 1], b[:, 2], b[:, 3]
    xs = jnp.stack(
        [min_x - level * min_y, min_x - level * max_y,
         max_x - level * min_y, max_x - level * max_y], axis=1)
    new_min_x = jnp.clip(jnp.floor(jnp.min(xs, axis=1)), 0.0, float(W))
    new_max_x = jnp.clip(jnp.ceil(jnp.max(xs, axis=1)), 0.0, float(W))
    out = jnp.stack([new_min_x, min_y, new_max_x, max_y], axis=1)
    return out.astype(bboxs.dtype)


# ----------------------------------------------------------------------------- module wrapper
class ShearX_BBox:
    """JAX/Pallas port of the PyTorch module.  The host-side `torch.rand(1) < p` coin flip is made
    deterministic (sampled from the provided PRNG key) and gated with lax.cond so the skipped path
    costs ~0 bytes (no kernel launch, no HBM copy)."""

    def __init__(self, p, level, replace=128):
        self.p = p
        self.level = level
        self.replace = replace

    def __call__(self, image, bboxs, key):
        if bboxs is None:
            return (image, bboxs)
        H, W = image.shape[-2], image.shape[-1]
        applied = jax.random.bernoulli(key, self.p)

        def _shear_branch():
            img = shear_x_image_pallas(image, self.level, self.replace)
            bb = shear_bboxes(bboxs, self.level, W, H)
            return img, bb

        def _skip_branch():
            return image, bboxs

        return lax.cond(applied, _shear_branch, _skip_branch)


# ----------------------------------------------------------------------------- pure-JAX reference
def _reference_shear_image(image, shifts, replace):
    """Reference with identical per-row-shift convention (for correctness checks)."""
    C, H, W = image.shape
    s = jnp.asarray(shifts, jnp.int32)                         # (H,)
    x = jnp.arange(W, dtype=jnp.int32)
    src = x[None, :] + s[:, None]                              # (H, W)
    valid = (src >= 0) & (src < W)
    srcc = jnp.clip(src, 0, W - 1)
    rows = jnp.arange(H, dtype=jnp.int32)[:, None]
    gathered = image[:, rows, srcc]                            # (C, H, W)
    return jnp.where(valid[None, :, :], gathered.astype(jnp.float32), jnp.float32(replace))


if __name__ == "__main__":
    key = jax.random.PRNGKey(0)
    k_img, k_img2, k_coin = jax.random.split(key, 3)

    level, replace = 0.3, 128

    # --- small image, single row-block path --------------------------------------------------
    C, H, W = 3, 16, 16
    image = jax.random.uniform(k_img, (C, H, W), jnp.float32, 0.0, 255.0)
    bboxs = jnp.array([[2, 3, 12, 13],
                       [0, 0, 8, 8],
                       [5, 6, 16, 16]], dtype=jnp.int32)

    out = jax.block_until_ready(shear_x_image_pallas(image, level, replace))
    ref = _reference_shear_image(image, _row_shifts(H, level), replace)
    assert out.shape == image.shape and out.dtype == image.dtype   # dtype-preserving
    assert bool(jnp.allclose(out.astype(jnp.float32), ref, atol=1e-5)), "shear mismatch (small)"

    # --- larger image exercising the multi-row-block (pl.when-specialized) path --------------
    C2, H2, W2 = 3, 32, 128
    image2 = jax.random.uniform(k_img2, (C2, H2, W2), jnp.float32, 0.0, 255.0)
    out2 = jax.block_until_ready(shear_x_image_pallas(image2, level, replace, row_block=8))
    ref2 = _reference_shear_image(image2, _row_shifts(H2, level), replace)
    assert bool(jnp.allclose(out2.astype(jnp.float32), ref2, atol=1e-5)), "shear mismatch (tiled)"

    # --- negative level (left-fill branch) ----------------------------------------------------
    out3 = jax.block_until_ready(shear_x_image_pallas(image, -0.25, replace))
    ref3 = _reference_shear_image(image, _row_shifts(H, -0.25), replace)
    assert bool(jnp.allclose(out3.astype(jnp.float32), ref3, atol=1e-5)), "shear mismatch (neg)"

    # --- large shear: |shift| >= W full-fill bands --------------------------------------------
    image4 = jax.random.uniform(k_img, (1, 16, 8), jnp.float32, 0.0, 255.0)
    out4 = jax.block_until_ready(shear_x_image_pallas(image4, 2.0, replace))
    ref4 = _reference_shear_image(image4, _row_shifts(16, 2.0), replace)
    assert bool(jnp.allclose(out4.astype(jnp.float32), ref4, atol=1e-5)), "shear mismatch (fill)"

    # --- module-style calls (API parity with the PyTorch forward) ----------------------------
    mod1 = ShearX_BBox(1.0, level, replace)        # always applied
    img_a, bb_a = mod1(image, bboxs, k_coin)
    jax.block_until_ready(img_a)
    assert bool(jnp.allclose(img_a.astype(jnp.float32), ref, atol=1e-5))
    assert bb_a.shape == bboxs.shape and bb_a.dtype == bboxs.dtype

    mod0 = ShearX_BBox(0.0, level, replace)        # never applied -> exact passthrough
    img_s, bb_s = mod0(image, bboxs, k_coin)
    assert bool(jnp.allclose(img_s, image)) and bool(jnp.array_equal(bb_s, bboxs))

    # bboxs=None passes straight through, as in the original module.
    same_img, none_bb = mod1(image, None, k_coin)
    assert none_bb is None and same_img is image

    print("KERNEL_OK")
</pallas_src>

<mosaic_0001>
module attributes {stable_mosaic.version = 11 : i64} {
  func.func @kernel(%arg0: i32, %arg1: i32, %arg2: memref<1x16x16xf32, #tpu.memory_space<vmem>>, %arg3: memref<1x16x16xf32, #tpu.memory_space<vmem>>) attributes {dimension_semantics = [#tpu.dimension_semantics<parallel>, #tpu.dimension_semantics<parallel>], iteration_bounds = array<i64: 3, 1>, scalar_prefetch = 0 : i64, scratch_operands = 0 : i64, tpu.core_type = #tpu.core_type<tc>, window_params = [{transform_indices = @transform_0, window_bounds = array<i64: 1, 16, 16>}, {transform_indices = @transform_1, window_bounds = array<i64: 1, 16, 16>}]} {
    %cst = arith.constant 1.280000e+02 : f32
    %0 = vector.broadcast %cst : f32 to vector<1x16x16xf32>
    %c0 = arith.constant 0 : index
    %c0_0 = arith.constant 0 : index
    %c0_1 = arith.constant 0 : index
    %1 = vector.load %arg2[%c0, %c0_0, %c0_1] : memref<1x16x16xf32, #tpu.memory_space<vmem>>, vector<1x2x16xf32>
    %c0_2 = arith.constant 0 : index
    %c0_3 = arith.constant 0 : index
    %c0_4 = arith.constant 0 : index
    %2 = vector.load %arg3[%c0_2, %c0_3, %c0_4] : memref<1x16x16xf32, #tpu.memory_space<vmem>>, vector<1x2x16xf32>
    tpu.vector_store %arg3[%c0_2, %c0_3, %c0_4], %1 {strides = array<i32>} : memref<1x16x16xf32, #tpu.memory_space<vmem>>, vector<1x2x16xf32>,
    %c0_5 = arith.constant 0 : index
    %c2 = arith.constant 2 : index
    %c1 = arith.constant 1 : index
    %3 = vector.load %arg2[%c0_5, %c2, %c1] : memref<1x16x16xf32, #tpu.memory_space<vmem>>, vector<1x3x15xf32>
    %4 = vector.extract_strided_slice %0 {offsets = [0, 2, 0], sizes = [1, 3, 1], strides = [1, 1, 1]} : vector<1x16x16xf32> to vector<1x3x1xf32>
    %5 = tpu.concatenate %3, %4 in 2 : vector<1x3x15xf32>, vector<1x3x1xf32> -> vector<1x3x16xf32>
    %c0_6 = arith.constant 0 : index
    %c2_7 = arith.constant 2 : index
    %c0_8 = arith.constant 0 : index
    %6 = vector.load %arg3[%c0_6, %c2_7, %c0_8] : memref<1x16x16xf32, #tpu.memory_space<vmem>>, vector<1x3x16xf32>
    tpu.vector_store %arg3[%c0_6, %c2_7, %c0_8], %5 {strides = array<i32>} : memref<1x16x16xf32, #tpu.memory_space<vmem>>, vector<1x3x16xf32>,
    %c0_9 = arith.constant 0 : index
    %c5 = arith.constant 5 : index
    %c2_10 = arith.constant 2 : index
    %7 = vector.load %arg2[%c0_9, %c5, %c2_10] : memref<1x16x16xf32, #tpu.memory_space<vmem>>, vector<1x3x14xf32>
    %8 = vector.extract_strided_slice %0 {offsets = [0, 5, 0], sizes = [1, 3, 2], strides = [1, 1, 1]} : vector<1x16x16xf32> to vector<1x3x2xf32>
    %9 = tpu.concatenate %7, %8 in 2 : vector<1x3x14xf32>, vector<1x3x2xf32> -> vector<1x3x16xf32>
    %c0_11 = arith.constant 0 : index
    %c5_12 = arith.constant 5 : index
    %c0_13 = arith.constant 0 : index
    %10 = vector.load %arg3[%c0_11, %c5_12, %c0_13] : memref<1x16x16xf32, #tpu.memory_space<vmem>>, vector<1x3x16xf32>
    tpu.vector_store %arg3[%c0_11, %c5_12, %c0_13], %9 {strides = array<i32>} : memref<1x16x16xf32, #tpu.memory_space<vmem>>, vector<1x3x16xf32>,
    %c0_14 = arith.constant 0 : index
    %c8 = arith.constant 8 : index
    %c3 = arith.constant 3 : index
    %11 = vector.load %arg2[%c0_14, %c8, %c3] : memref<1x16x16xf32, #tpu.memory_space<vmem>>, vector<1x4x13xf32>
    %12 = vector.extract_strided_slice %0 {offsets = [0, 8, 0], sizes = [1, 4, 3], strides = [1, 1, 1]} : vector<1x16x16xf32> to vector<1x4x3xf32>
    %13 = tpu.concatenate %11, %12 in 2 : vector<1x4x13xf32>, vector<1x4x3xf32> -> vector<1x4x16xf32>
    %c0_15 = arith.constant 0 : index
    %c8_16 = arith.constant 8 : index
    %c0_17 = arith.constant 0 : index
    %14 = vector.load %arg3[%c0_15, %c8_16, %c0_17] : memref<1x16x16xf32, #tpu.memory_space<vmem>>, vector<1x4x16xf32>
    tpu.vector_store %arg3[%c0_15, %c8_16, %c0_17], %13 {strides = array<i32>} : memref<1x16x16xf32, #tpu.memory_space<vmem>>, vector<1x4x16xf32>,
    %c0_18 = arith.constant 0 : index
    %c12 = arith.constant 12 : index
    %c4 = arith.constant 4 : index
    %15 = vector.load %arg2[%c0_18, %c12, %c4] : memref<1x16x16xf32, #tpu.memory_space<vmem>>, vector<1x3x12xf32>
    %16 = vector.extract_strided_slice %0 {offsets = [0, 12, 0], sizes = [1, 3, 4], strides = [1, 1, 1]} : vector<1x16x16xf32> to vector<1x3x4xf32>
    %17 = tpu.concatenate %15, %16 in 2 : vector<1x3x12xf32>, vector<1x3x4xf32> -> vector<1x3x16xf32>
    %c0_19 = arith.constant 0 : index
    %c12_20 = arith.constant 12 : index
    %c0_21 = arith.constant 0 : index
    %18 = vector.load %arg3[%c0_19, %c12_20, %c0_21] : memref<1x16x16xf32, #tpu.memory_space<vmem>>, vector<1x3x16xf32>
    tpu.vector_store %arg3[%c0_19, %c12_20, %c0_21], %17 {strides = array<i32>} : memref<1x16x16xf32, #tpu.memory_space<vmem>>, vector<1x3x16xf32>,
    %c0_22 = arith.constant 0 : index
    %c15 = arith.constant 15 : index
    %c5_23 = arith.constant 5 : index
    %19 = vector.load %arg2[%c0_22, %c15, %c5_23] : memref<1x16x16xf32, #tpu.memory_space<vmem>>, vector<1x1x11xf32>
    %20 = vector.extract_strided_slice %0 {offsets = [0, 15, 0], sizes = [1, 1, 5], strides = [1, 1, 1]} : vector<1x16x16xf32> to vector<1x1x5xf32>
    %21 = tpu.concatenate %19, %20 in 2 : vector<1x1x11xf32>, vector<1x1x5xf32> -> vector<1x1x16xf32>
    %c0_24 = arith.constant 0 : index
    %c15_25 = arith.constant 15 : index
    %c0_26 = arith.constant 0 : index
    %22 = vector.load %arg3[%c0_24, %c15_25, %c0_26] : memref<1x16x16xf32, #tpu.memory_space<vmem>>, vector<1x1x16xf32>
    tpu.vector_store %arg3[%c0_24, %c15_25, %c0_26], %21 {strides = array<i32>} : memref<1x16x16xf32, #tpu.memory_space<vmem>>, vector<1x1x16xf32>,
    return
  }
  func.func @transform_0(%arg0: i32, %arg1: i32) -> (i32, i32, i32) {
    %c0_i32 = arith.constant 0 : i32
    %c0_i32_0 = arith.constant 0 : i32
    return %arg0, %arg1, %c0_i32 : i32, i32, i32
  }
  func.func @transform_1(%arg0: i32, %arg1: i32) -> (i32, i32, i32) {
    %c0_i32 = arith.constant 0 : i32
    %c0_i32_0 = arith.constant 0 : i32
    return %arg0, %arg1, %c0_i32 : i32, i32, i32
  }
}

</mosaic_0001>

<bundles_post_ra>
// kernel: tpu_custom_call.1
= control target key start
LH: loop header
LB: loop body
LE: loop exit
PB: predicated region body
PF: predicated region fallthrough
CT: control target
= control target key end

     0   :  { %6 = vsyncpa [#allocation3], 0  ;;  %s679_s0 = inlined_call_operand.hbm [shape: f32[3,16,16], index: 0, kind: input, shape index: {}]   ;;  %s680_s1 = inlined_call_operand.hbm [shape: f32[3,16,16], index: 1, kind: output, shape index: {}]  }
   0x1   :  { %8 = vsyncpa [#allocation3 + $0x1], 0 }
   0x2   :  { %9 = vsyncpa [#allocation4], 0 }
   0x3   :  { %11 = vsyncpa [#allocation4 + $0x1], 0  ;;  %s523_s6 = smov 0   ;;  %s525_s7 = smov 0  }
   0x4   :  { %s527_s8 = smov 0   ;;  %s529_s9 = smov 0  }
   0x5   :  { %s531_s10 = smov 0   ;;  %s533_s11 = smov 0  }
   0x6 LB: > { %s304_s12 = sadd.s32 4294967295, %s500_s11   ;;  %s305_s13 = sadd.s32 4294967294, %s500_s11   ;;  %s500_s11 = sphi %s533_s11, %s17_s11   ;;  %s496_s10 = sphi %s531_s10, %s690_s10   ;;  %s492_s9 = sphi %s529_s9, %s689_s9   ;;  %s488_s8 = sphi %s527_s8, %s688_s8   ;;  %s484_s7 = sphi %s525_s7, %s687_s7   ;;  %s480_s6 = sphi %s523_s6, %s686_s6  }
   0x7   : > { %s29_s14 = sadd.s32 1, %s496_s10  ;;  %s38_s15 = sadd.s32 1, %s488_s8 }
   0x8   : > { %p31_p0 = scmp.ge.s32.totalorder %s29_s14, 3  ;;  %p45_p1 = scmp.ne.s32.totalorder %s488_s8, %s484_s7 }
   0x9   : > { %p46_p2 = scmp.eq.s32.totalorder %s500_s11, 0  ;;  %p51_p3 = scmp.ne.s32.totalorder %s484_s7, %s480_s6 }
   0xa   : > { %s692_s14 = smov (%p31_p0, %s29_s14), 0  ;;  %p52_p5 = scmp.eq.s32.totalorder %s304_s12, 0 }
   0xb   : > { %p564_p4 = por %p46_p2, %p45_p1  ;;  %s33_s17 = ssub.s32 %s496_s10, %s692_s14 }
   0xc   : > { %p77_p6 = scmp.eq.s32.totalorder %s304_s12, 2  ;;  %p36_p7 = scmp.eq.s32.totalorder %s33_s17, 0 }
   0xd   : > { %p570_p8 = por %p52_p5, %p51_p3  ;;  %p83_p10 = scmp.eq.s32.totalorder %s305_s13, 2 }
   0xe   : > { %p574_p9 = por %p77_p6, %p45_p1  ;;  %p333_p12 = scmp.lt.s32.totalorder %s500_s11, 3 }
   0xf   : > { %s579_s20 = scalar_select %p36_p7, %s488_s8, %s38_s15  }
  0x10   : > { %p581_p11 = por %p83_p10, %p51_p3  ;;  %s103_s22 = sand.u32 1, %s488_s8  }
  0x11   : > { %s308_s23 = sshll.u32 %s103_s22, 4  ;;  %s319_s24 = sshll.u32 %s496_s10, 8 }
  0x12   : > { %s115_s27 = scalar_lea.hbm %s679_s0, %s319_s24  ;;  %s107_s28 = scalar_lea.vmem [#allocation2], %s308_s23 }
  0x13   : > { %s116_s29 = sshll.u32 %s107_s28, 4  ;;  %p593_p13 = pnand %p333_p12, %p564_p4  ;;  %s117_s29 = int_to_ptr.vmem [resolvable:$true] %s116_s29 }
  0x14   : > { %p311_p0 = scmp.ge.s32.totalorder %s500_s11, 1  ;;  %s104_s2 = scalar_lea.sflag [#allocation3], %s103_s22 }
  0x15   : > { %p394_p1 = pneg %p593_p13  ;;  %s405_s3 = scalar_lea.vmem %s117_s29, 256 }
  0x16   : > { %p406_p2 = scmp.ne.s32.totalorder %s117_s29, %s405_s3  ;;  %s502_s4 = smov [#allocation2]  }
  0x17   : > { %s410_s5 = sshll.u32 %s502_s4, 4  ;;  %s411_s5 = int_to_ptr.vmem [resolvable:$false] %s410_s5 }
  0x18   : > { %p408_p3 = pnand %p406_p2, %p394_p1  ;;  %s412_s12 = scalar_lea.vmem %s411_s5, 512 }
  0x19   : > { %p413_p6 = scmp.lt.s32.totalorder %s117_s29, %s411_s5  ;;  %p414_p7 = scmp.lt.s32.totalorder %s412_s12, %s405_s3 }
  0x1a   : > { %p409_p5 = pneg %p408_p3 }
  0x1b   : > { %p415_p10 = por %p414_p7, %p413_p6 }
  0x1d   : > { %p416_p4 = pnand %p415_p10, %p409_p5 }
  0x1f   : > { %419 = shalt.err (!%p416_p4)
}
  0x20   : > { %s503_s13 = smov 128   ;;  %s504_s15 = smov 8  }
  0x21   : > { %328 = dma.hbm_to_vmem [thread:$0]  (!%p593_p13), %s115_s27, 256, %s117_s29, %s104_s2, %s503_s13, %s503_s13, %s504_s15  }
  0x22   : > { %p124_p12 = scmp.lt.s32.totalorder %s500_s11, 4 }
  0x24   : > { %p125_p1 = pnand %p311_p0, %p124_p12 }
  0x25   : > { %s606_s16 = sand.u32 (!%p125_p1), 1, %s484_s7  }
  0x26   : > { %128 = sbr.rel (%p125_p1) target bundleno = 184 (0xb8), region = 24  ;;  %s312_s17 = sshll.u32 (!%p125_p1), %s606_s16, 4 }
  0x27   : > { %s131_s22 = scalar_lea.sflag (!%p125_p1), [#allocation3], %s606_s16  ;;  %s134_s23 = scalar_lea.vmem (!%p125_p1), [#allocation2], %s312_s17 }
  0x2b   : > { %471 = dma.done.wait (%p570_p8), %s131_s22, 256  }
  0x2c   : > { %473 = vsyncadd (%p570_p8), %s131_s22, 4294967040  ;;  %v158_v0 = vld [vmem:[%s134_s23 + $0x2] sm:$0x7]  ;;  %v175_v1 = vld [vmem:[%s134_s23 + $0x8] sm:$0xf]  ;;  %vm156_vm0 = vcmask 123904  }
  0x2d   : > { %s505_s24 = smov 127   ;;  %s506_s25 = smov 125   ;;  %v167_v2 = vld [vmem:[%s134_s23 + $0x5] sm:$0x7]  ;;  %v184_v3 = vld [vmem:[%s134_s23 + $0xc] sm:$0x7] }
  0x2e   : > { %160 = vrot.lane.b32.xlu0 %v158_v0, %s505_s24  ;;  %177 = vrot.lane.b32.xlu1 %v175_v1, %s506_s25  ;;  %v155_v4 = vld [vmem:[%s134_s23] sm:$0x3]  ;;  %s614_s26 = scalar_lea.vmem [#allocation5], %s312_s17  ;;  %s507_s27 = smov 126   ;;  %v192_v5 = vld [vmem:[%s134_s23 + $0xf] sm:$0x1] }
  0x2f   : > { %157 = vst.msk [vmem:[%s614_s26] sm:$0x3] %vm156_vm0, %v155_v4  ;;  %s508_s18 = smov 124   ;;  %s509_s28 = smov 123   ;;  %vm163_vm1 = vcmask 121856   ;;  %vm180_vm2 = vcmask 105472  }
  0x30   : > { %vm165_vm3 = vcmask 124928   ;;  %vm182_vm4 = vcmask 125952   ;;  %vm172_vm5 = vcmask 113664   ;;  %vm189_vm6 = vcmask 97280   ;;  %s217_s29 = sshll.u32 %s614_s26, 4  ;;  %s320_s30 = sshll.u32 %s492_s9, 8  ;;  %s622_s29 = int_to_ptr.vmem [resolvable:$true] %s217_s29 }
  0x31   : > { %vm197_vm7 = vcmask 89088   ;;  %vm199_vm8 = vcmask 122880   ;;  %s631_s4 = scalar_lea.hbm %s680_s1, %s320_s30  ;;  %s202_s9 = scalar_lea.sflag [#allocation4], %s606_s16 }
  0x32   : > { %169 = vrot.lane.b32.xlu0 %v167_v2, %s507_s27  ;;  %186 = vrot.lane.b32.xlu1 %v184_v3, %s508_s18  ;;  %s420_s5 = scalar_lea.vmem %s622_s29, 256  ;;  %s510_s12 = smov [#allocation5]  }
  0x33   : > { %p421_p8 = scmp.ne.s32.totalorder %s622_s29, %s420_s5  ;;  %s424_s13 = sshll.u32 %s510_s12, 4  ;;  %s425_s13 = int_to_ptr.vmem [resolvable:$false] %s424_s13 }
  0x34   : > { %s426_s15 = scalar_lea.vmem %s425_s13, 512  ;;  %p427_p2 = scmp.lt.s32.totalorder %s622_s29, %s425_s13 }
  0x35   : > { %p422_p13 = pnand %p421_p8, %p574_p9  ;;  %p428_p3 = scmp.lt.s32.totalorder %s426_s15, %s420_s5 }
  0x36   : > { %194 = vrot.lane.b32.xlu0 %v192_v5, %s509_s28 }
  0x37   : > { %p423_p0 = pneg %p422_p13  ;;  %p429_p5 = por %p428_p3, %p427_p2 }
  0x39   : > { %p430_p6 = pnand %p429_p5, %p423_p0 }
  0xa0   : > { %v161_v6 = vpop.permute.xlu0 %160  ;;  %v178_v7 = vpop.permute.xlu1 %177 }
  0xa1   : > { %v164_v8 = vsel %vm163_vm1, %v161_v6, 128.0  ;;  %v181_v9 = vsel %vm180_vm2, %v178_v7, 128.0 }
  0xa2   : > { %166 = vst.msk [vmem:[%s614_s26 + $0x2] sm:$0x7] %vm165_vm3, %v164_v8 }
  0xa3   : > { %183 = vst.msk [vmem:[%s614_s26 + $0x8] sm:$0xf] %vm182_vm4, %v181_v9 }
  0xa4   : > { %v170_v10 = vpop.permute.xlu0 %169  ;;  %v187_v11 = vpop.permute.xlu1 %186 }
  0xa5   : > { %v173_v12 = vsel %vm172_vm5, %v170_v10, 128.0  ;;  %v190_v13 = vsel %vm189_vm6, %v187_v11, 128.0 }
  0xa6   : > { %174 = vst.msk [vmem:[%s614_s26 + $0x5] sm:$0x7] %vm165_vm3, %v173_v12  ;;  %191 = vst.msk [vmem:[%s614_s26 + $0xc] sm:$0x7] %vm165_vm3, %v190_v13 }
  0xa8   : > { %v195_v14 = vpop.permute.xlu0 %194 }
  0xa9   : > { %v198_v15 = vsel %vm197_vm7, %v195_v14, 128.0 }
  0xaa   : > { %200 = vst.msk [vmem:[%s614_s26 + $0xf] sm:$0x1] %vm199_vm8, %v198_v15 }
  0xab   : > { %433 = shalt.err (!%p430_p6)
}
  0xac   : > { %s434_s17 = scalar_lea.hbm %s631_s4, 256  ;;  %s438_s24 = scalar_lea.hbm %s680_s1, 768 }
  0xad   : > { %p435_p7 = scmp.ne.s32.totalorder %s631_s4, %s434_s17  ;;  %p439_p12 = scmp.lt.s32.totalorder %s631_s4, %s680_s1 }
  0xae   : > { %p440_p1 = scmp.lt.s32.totalorder %s438_s24, %s434_s17 }
  0xaf   : > { %p436_p10 = pnand %p435_p7, %p574_p9 }
  0xb0   : > { %p441_p8 = por %p440_p1, %p439_p12 }
  0xb1   : > { %p437_p4 = pneg %p436_p10 }
  0xb3   : > { %p442_p13 = pnand %p441_p8, %p437_p4 }
  0xb5   : > { %445 = shalt.err (!%p442_p13)
}
  0xb6   : > { %s511_s27 = smov 128   ;;  %s512_s18 = smov 8  }
  0xb7   : > { %323 = dma.vmem_to_hbm [thread:$0]  (%p574_p9), %s622_s29, 256, %s631_s4, %s202_s9, %s511_s27, %s511_s27, %s512_s18  }
  0xb8 PF: > { %p334_p0 = scmp.ge.s32.totalorder %s500_s11, 2  ;;  %s232_s28 = sand.u32 1, %s480_s6  }
  0xb9   : > { %s233_s30 = scalar_lea.sflag [#allocation4], %s232_s28 }
  0xba   : > { %p330_p2 = pnand %p334_p0, %p581_p11 }
  0xbc   : > { %p331_p3 = pneg %p330_p2 }
  0xbe   : > { %475 = dma.done.wait (%p331_p3), %s233_s30, 256  }
  0xbf   : > { %477 = vsyncadd (%p331_p3), %s233_s30, 4294967040  ;;  %s17_s11 = sadd.s32 1, %s500_s11   ;;  %s686_s6 = smov %s484_s7 }
  0xc0   : > { %p14_p5 = scmp.ge.s32.totalorder %s17_s11, 5   ;;  %s687_s7 = smov %s488_s8 }
  0xc1   : > { %s688_s8 = smov %s579_s20  ;;  %s689_s9 = smov %s496_s10 }
  0xc2   : > { %s690_s10 = smov %s692_s14  ;;  %16 = sbr.rel (!%p14_p5) target bundleno = 6 (0x6), region = 69 }
  0xc7   :  { %238 = vsyncpa [#allocation3], 1 }
  0xc8   :  { %240 = vsyncpa [#allocation3 + $0x1], 1 }
  0xc9   :  { %241 = vsyncpa [#allocation4], 1 }
  0xca   :  { %243 = vsyncpa [#allocation4 + $0x1], 1 }

</bundles_post_ra>
